<compile_context>
chip_gen: v7x
topology: tpu7x:2x2x1
jax: 0.10.0
libtpu: 0.0.40
codegen_flags: <defaults>
</compile_context>

<pallas_src>
import functools
import math

import jax
import jax.numpy as jnp
from jax.experimental import pallas as pl
from jax.experimental.pallas import tpu as pltpu


def _round_up(x, m):
    return ((x + m - 1) // m) * m


@functools.lru_cache(maxsize=None)
def _vmem_limit_bytes():
    # Generation-aware budget: ~3/4 of physical VMEM (v5e/v6e: 128 MiB -> 96 MiB,
    # v7x: 64 MiB -> 48 MiB). Conservative fallback if the query is unavailable.
    try:
        cap = int(pltpu.get_tpu_info().vmem_capacity_bytes)
    except Exception:
        cap = 64 * 1024 * 1024
    return max(32 * 1024 * 1024, (cap // 4) * 3)


def _choose_row_tile(m):
    if m >= 512:
        return 256
    if m >= 256:
        return 128
    # Small M: still emit >=2 row tiles so both v7x TensorCores get work.
    return max(8, _round_up((m + 1) // 2, 8))


def _choose_col_tile(n):
    # Tile the output/weight columns so the double-buffered (K, tn) weight block stays
    # well under VMEM even at large d_model (review: v7x 64 MiB).
    if n <= 512:
        return n
    for t in (512, 256, 128):
        if n % t == 0:
            return t
    return n  # irregular N: full-dim block is always a legal BlockSpec


def _head_group(num_heads, d_k):
    """Smallest head group whose combined column width is lane-aligned (mult of 128)."""
    for hg in range(1, num_heads + 1):
        if num_heads % hg == 0 and (hg * d_k) % 128 == 0:
            return hg
    return num_heads  # fall back to the full d_model column (full-dim block is legal)


# ----------------------------- Linear: x @ W + b -----------------------------

def _linear_kernel(x_ref, w_ref, b_ref, o_ref):
    acc = jnp.dot(x_ref[...], w_ref[...], preferred_element_type=jnp.float32)
    o_ref[...] = (acc + b_ref[...]).astype(o_ref.dtype)


def linear_pallas(x2d, w, b, *, compute_dtype=jnp.bfloat16, out_dtype=None):
    """x2d: (M, K); w: (K, N) (stored input-major); b: (N,). Returns (M, N)."""
    M, K = x2d.shape
    N = w.shape[1]
    out_dtype = out_dtype if out_dtype is not None else compute_dtype

    tm = _choose_row_tile(M)
    tn = _choose_col_tile(N)
    Mp = _round_up(M, tm)
    if Mp != M:
        x2d = jnp.pad(x2d, ((0, Mp - M), (0, 0)))

    xc = x2d.astype(compute_dtype)
    wc = w.astype(compute_dtype)
    bc = b.reshape(1, N).astype(jnp.float32)

    # TODO(synk): for very large K a K-reduction grid axis with an f32 VMEM accumulator
    # would be needed; activations at d_model-scale K fit comfortably as a single block.
    itemsize = jnp.dtype(compute_dtype).itemsize
    cost = pl.CostEstimate(
        flops=2 * Mp * K * N,
        transcendentals=0,
        bytes_accessed=(Mp * K + K * N) * itemsize + N * 4
        + Mp * N * jnp.dtype(out_dtype).itemsize,
    )

    out = pl.pallas_call(
        _linear_kernel,
        out_shape=jax.ShapeDtypeStruct((Mp, N), out_dtype),
        grid_spec=pltpu.PrefetchScalarGridSpec(
            num_scalar_prefetch=0,
            # Column tile outer => the weight block is fetched once per column tile
            # (deduped across the inner row sweep); activations stream.
            grid=(N // tn, Mp // tm),
            in_specs=[
                pl.BlockSpec((tm, K), lambda j, i: (i, 0)),   # activation rows
                pl.BlockSpec((K, tn), lambda j, i: (0, j)),   # weight column tile
                pl.BlockSpec((1, tn), lambda j, i: (0, j)),   # bias
            ],
            out_specs=pl.BlockSpec((tm, tn), lambda j, i: (i, j)),
        ),
        compiler_params=pltpu.CompilerParams(
            dimension_semantics=("parallel", "parallel"),
            vmem_limit_bytes=_vmem_limit_bytes(),
        ),
        cost_estimate=cost,
    )(xc, wc, bc)
    return out[:M]


# -------------------- Scaled dot-product attention (flash) --------------------

def _attention_kernel(kv_hi_ref, q_ref, k_ref, v_ref, mask_ref, o_ref,
                      m_sc, l_sc, acc_sc, *, scale, hg, d_k):
    b = pl.program_id(0)
    qi = pl.program_id(2)
    ki = pl.program_id(3)

    @pl.when(ki == 0)
    def _init():
        m_sc[...] = jnp.full_like(m_sc, -jnp.inf)
        l_sc[...] = jnp.zeros_like(l_sc)
        acc_sc[...] = jnp.zeros_like(acc_sc)

    # Skip kv tiles that are fully masked for this (batch, q-tile); their DMAs are
    # deduplicated by the clamped index_maps in the wrapper.
    @pl.when(ki <= kv_hi_ref[b, qi])
    def _body():
        masked = mask_ref[0] == 0              # (tq, tk) bool; True => masked_fill(-1e9)
        for h in range(hg):                    # heads = static lane-column blocks
            sl = slice(h * d_k, (h + 1) * d_k)
            q_h = q_ref[0, :, sl] * scale      # scale on q: d_k wide, not tk wide
            s = jax.lax.dot_general(q_h, k_ref[0, :, sl], (((1,), (1,)), ((), ())),
                                    preferred_element_type=jnp.float32)
            s = jnp.where(masked, -1e9, s)     # masked_fill(mask == 0, -1e9)
            m_prev = m_sc[:, h:h + 1]
            m_new = jnp.maximum(m_prev, s.max(axis=-1, keepdims=True))
            alpha = jnp.exp(m_prev - m_new)
            p = jnp.exp(s - m_new)
            l_sc[:, h:h + 1] = alpha * l_sc[:, h:h + 1] + p.sum(axis=-1, keepdims=True)
            acc_sc[:, sl] = alpha * acc_sc[:, sl] + jnp.dot(
                p.astype(v_ref.dtype), v_ref[0, :, sl],
                preferred_element_type=jnp.float32)
            m_sc[:, h:h + 1] = m_new

    @pl.when(ki == pl.num_programs(3) - 1)
    def _finalize():
        for h in range(hg):
            sl = slice(h * d_k, (h + 1) * d_k)
            l_h = l_sc[:, h:h + 1]
            # Degenerate rows where every visited key was masked emit zeros (reference
            # would emit a uniform average of V; such rows are padding/garbage anyway).
            inv = jnp.where(l_h > 0.0, pl.reciprocal(l_h, approx=True), 0.0)
            o_ref[0, :, sl] = (acc_sc[:, sl] * inv).astype(o_ref.dtype)


def attention_pallas(q, k, v, mask3, *, num_heads, scale, compute_dtype=jnp.bfloat16):
    """q: (B,Sq,d_model); k,v: (B,Sk,d_model); mask3: (B,Sq,Sk) int8 (0 => masked)."""
    B, Sq, d_model = q.shape
    Sk = k.shape[1]
    d_k = d_model // num_heads
    hg = _head_group(num_heads, d_k)   # heads per grid step (lane-aligned column block)
    G = num_heads // hg
    W = hg * d_k

    tq = 256 if Sq >= 256 else max(32, _round_up(Sq, 32))
    tk = 256 if Sk >= 256 else max(32, _round_up(Sk, 32))
    Sqp, Skp = _round_up(Sq, tq), _round_up(Sk, tk)
    nq, nk = Sqp // tq, Skp // tk

    def pad_seq(x, S, Sp):
        x = x.astype(compute_dtype)
        return x if Sp == S else jnp.pad(x, ((0, 0), (0, Sp - S), (0, 0)))

    qf, kf, vf = pad_seq(q, Sq, Sqp), pad_seq(k, Sk, Skp), pad_seq(v, Sk, Skp)
    m3 = mask3
    if (Sqp, Skp) != (Sq, Sk):
        m3 = jnp.pad(m3, ((0, 0), (0, Sqp - Sq), (0, Skp - Sk)))  # padded keys masked

    # Per (batch, q-tile) upper bound of kv tiles containing any unmasked key.
    tile_any = m3.reshape(B, nq, tq, nk, tk).max(axis=(2, 4)) > 0
    kv_hi = jnp.max(
        jnp.where(tile_any, jnp.arange(nk, dtype=jnp.int32)[None, None, :], 0),
        axis=-1).astype(jnp.int32)                                  # (B, nq)

    kernel = functools.partial(_attention_kernel, scale=scale, hg=hg, d_k=d_k)

    def q_map(b, g, qi, ki, hi):
        return (b, qi, g)

    def kv_map(b, g, qi, ki, hi):
        return (b, jnp.minimum(ki, hi[b, qi]), g)     # clamp => skipped tiles dedup DMA

    def mk_map(b, g, qi, ki, hi):
        return (b, qi, jnp.minimum(ki, hi[b, qi]))

    def o_map(b, g, qi, ki, hi):
        return (b, qi, g)

    itemsize = jnp.dtype(compute_dtype).itemsize
    cost = pl.CostEstimate(
        flops=4 * B * num_heads * Sqp * Skp * d_k,
        transcendentals=B * num_heads * Sqp * Skp,
        bytes_accessed=(2 * B * Sqp * d_model + 2 * B * Skp * d_model) * itemsize
        + B * Sqp * Skp,
    )

    out = pl.pallas_call(
        kernel,
        out_shape=jax.ShapeDtypeStruct((B, Sqp, d_model), compute_dtype),
        grid_spec=pltpu.PrefetchScalarGridSpec(
            num_scalar_prefetch=1,
            grid=(B, G, nq, nk),
            in_specs=[
                pl.BlockSpec((1, tq, W), q_map),      # Q head-group columns
                pl.BlockSpec((1, tk, W), kv_map),     # K
                pl.BlockSpec((1, tk, W), kv_map),     # V
                pl.BlockSpec((1, tq, tk), mk_map),    # int8 head-invariant mask
            ],
            out_specs=pl.BlockSpec((1, tq, W), o_map),
            scratch_shapes=[
                pltpu.VMEM((tq, hg), jnp.float32),    # running max (per head)
                pltpu.VMEM((tq, hg), jnp.float32),    # running denom (per head)
                pltpu.VMEM((tq, W), jnp.float32),     # running numerator
            ],
        ),
        compiler_params=pltpu.CompilerParams(
            dimension_semantics=("parallel", "parallel", "parallel", "arbitrary"),
            vmem_limit_bytes=_vmem_limit_bytes(),
        ),
        cost_estimate=cost,
    )(kv_hi, qf, kf, vf, m3)

    return out[:, :Sq, :]


# ------------------------------ MHA forward pass ------------------------------

def _canonicalize_mask(mask, B, Sq, Sk):
    """Head-invariant (B, Sq, Sk) int8 mask; 0 => masked_fill(-1e9)."""
    if mask is None:
        return jnp.ones((B, Sq, Sk), jnp.int8)
    m = jnp.asarray(mask)
    if m.ndim == 4:
        # TODO(synk): masks whose values differ per head are not supported by the
        # head-grouped kernel (reference masks — causal / key padding — are invariant).
        m = m[:, 0]
    return jnp.broadcast_to(m != 0, (B, Sq, Sk)).astype(jnp.int8)


def multi_head_attention(Q, K, V, mask, params, *, num_heads,
                         compute_dtype=jnp.bfloat16):
    w_q, b_q, w_k, b_k, w_v, b_v, w_o, b_o = params
    B, Sq, d_model = Q.shape
    Sk = K.shape[1]
    assert d_model % num_heads == 0, "d_model must be divisible by num_heads"
    d_k = d_model // num_heads
    out_dtype = Q.dtype

    # Projections stay in (B, S, d_model) layout; heads live in column blocks of the
    # projection, so split_heads / combine_heads transposes (and their HBM round trips)
    # are folded into the attention BlockSpecs.
    q_p = linear_pallas(Q.reshape(B * Sq, d_model), w_q, b_q,
                        compute_dtype=compute_dtype).reshape(B, Sq, d_model)
    k_p = linear_pallas(K.reshape(B * Sk, d_model), w_k, b_k,
                        compute_dtype=compute_dtype).reshape(B, Sk, d_model)
    v_p = linear_pallas(V.reshape(B * Sk, d_model), w_v, b_v,
                        compute_dtype=compute_dtype).reshape(B, Sk, d_model)

    mask3 = _canonicalize_mask(mask, B, Sq, Sk)

    ctx = attention_pallas(q_p, k_p, v_p, mask3, num_heads=num_heads,
                           scale=1.0 / math.sqrt(d_k), compute_dtype=compute_dtype)

    # ctx is already in combined-heads (B, Sq, d_model) layout.
    out = linear_pallas(ctx.reshape(B * Sq, d_model), w_o, b_o,
                        compute_dtype=compute_dtype, out_dtype=out_dtype)
    return out.reshape(B, Sq, d_model)


# ----------------------------- init & reference -------------------------------

def init_params(key, d_model, dtype=jnp.float32):
    """nn.Linear-style uniform(-1/sqrt(fan_in), 1/sqrt(fan_in)); weights stored (in, out)."""
    keys = jax.random.split(key, 8)
    bound = 1.0 / math.sqrt(d_model)

    def lin(kw, kb):
        w = jax.random.uniform(kw, (d_model, d_model), dtype, -bound, bound)
        b = jax.random.uniform(kb, (d_model,), dtype, -bound, bound)
        return w, b

    w_q, b_q = lin(keys[0], keys[1])
    w_k, b_k = lin(keys[2], keys[3])
    w_v, b_v = lin(keys[4], keys[5])
    w_o, b_o = lin(keys[6], keys[7])
    return (w_q, b_q, w_k, b_k, w_v, b_v, w_o, b_o)


def mha_ref(Q, K, V, mask, params, num_heads):
    """Pure-JAX f32 reference mirroring the PyTorch module."""
    w_q, b_q, w_k, b_k, w_v, b_v, w_o, b_o = params
    P = jax.lax.Precision.HIGHEST
    B, Sq, d_model = Q.shape
    d_k = d_model // num_heads

    def split(x):
        return x.reshape(B, x.shape[1], num_heads, d_k).transpose(0, 2, 1, 3)

    q = split(jnp.dot(Q, w_q, precision=P) + b_q)
    k = split(jnp.dot(K, w_k, precision=P) + b_k)
    v = split(jnp.dot(V, w_v, precision=P) + b_v)
    scores = jnp.einsum("bhqd,bhkd->bhqk", q, k, precision=P) / math.sqrt(d_k)
    if mask is not None:
        scores = jnp.where(mask == 0, -1e9, scores)
    probs = jax.nn.softmax(scores, axis=-1)
    ctx = jnp.einsum("bhqk,bhkd->bhqd", probs, v, precision=P)
    ctx = ctx.transpose(0, 2, 1, 3).reshape(B, Sq, d_model)
    return jnp.dot(ctx, w_o, precision=P) + b_o


if __name__ == "__main__":
    key = jax.random.PRNGKey(0)
    keys = jax.random.split(key, 8)

    # ---- Test 1: bf16 path, causal mask, multi-tile kv (exercises kv-tile skipping
    #      and the clamped/deduped K/V index maps) ----
    batch, seq, dm, num_heads = 2, 512, 128, 4
    Q = jax.random.normal(keys[0], (batch, seq, dm), jnp.float32)
    K = jax.random.normal(keys[1], (batch, seq, dm), jnp.float32)
    V = jax.random.normal(keys[2], (batch, seq, dm), jnp.float32)
    params = init_params(keys[3], dm)
    causal = jnp.tril(jnp.ones((seq, seq), jnp.float32))[None, None]  # (1,1,S,S)

    out = multi_head_attention(Q, K, V, causal, params, num_heads=num_heads,
                               compute_dtype=jnp.bfloat16)
    out = jax.block_until_ready(out)
    ref = mha_ref(Q, K, V, causal, params, num_heads)
    assert out.shape == (batch, seq, dm)
    err = float(jnp.max(jnp.abs(out - ref)))
    assert jnp.allclose(out, ref, atol=6e-2, rtol=6e-2), f"bf16 mismatch, max err {err}"

    # ---- Test 2: f32 path, non-tile-aligned seq (padding), key-padding mask ----
    b2, s2, d2, h2 = 2, 200, 128, 4
    Q2 = jax.random.normal(keys[4], (b2, s2, d2), jnp.float32)
    K2 = jax.random.normal(keys[5], (b2, s2, d2), jnp.float32)
    V2 = jax.random.normal(keys[6], (b2, s2, d2), jnp.float32)
    params2 = init_params(keys[7], d2)
    lens = jnp.array([200, 150])
    kp_mask = (jnp.arange(s2)[None, :] < lens[:, None]).astype(jnp.float32)
    kp_mask = kp_mask[:, None, None, :]  # (B,1,1,Sk) key-padding mask

    out2 = multi_head_attention(Q2, K2, V2, kp_mask, params2, num_heads=h2,
                                compute_dtype=jnp.float32)
    out2 = jax.block_until_ready(out2)
    ref2 = mha_ref(Q2, K2, V2, kp_mask, params2, h2)
    err2 = float(jnp.max(jnp.abs(out2 - ref2)))
    assert jnp.allclose(out2, ref2, atol=1e-2, rtol=1e-2), f"f32 mismatch, max err {err2}"

    # ---- Test 3: mask=None path ----
    out3 = multi_head_attention(Q2, K2, V2, None, params2, num_heads=h2,
                                compute_dtype=jnp.float32)
    out3 = jax.block_until_ready(out3)
    ref3 = mha_ref(Q2, K2, V2, None, params2, h2)
    err3 = float(jnp.max(jnp.abs(out3 - ref3)))
    assert jnp.allclose(out3, ref3, atol=1e-2, rtol=1e-2), f"no-mask mismatch, max err {err3}"

    print("KERNEL_OK")
</pallas_src>

<mosaic_0001>
module attributes {stable_mosaic.version = 11 : i64} {
  func.func @_linear_kernel(%arg0: i32, %arg1: i32, %arg2: memref<256x128xbf16, #tpu.memory_space<vmem>>, %arg3: memref<128x128xbf16, #tpu.memory_space<vmem>>, %arg4: memref<1x128xf32, #tpu.memory_space<vmem>>, %arg5: memref<256x128xbf16, #tpu.memory_space<vmem>>) attributes {dimension_semantics = [#tpu.dimension_semantics<parallel>, #tpu.dimension_semantics<parallel>], iteration_bounds = array<i64: 1, 4>, scalar_prefetch = 0 : i64, scratch_operands = 0 : i64, tpu.core_type = #tpu.core_type<tc>, window_params = [{transform_indices = @transform_0, window_bounds = array<i64: 256, 128>}, {transform_indices = @transform_1, window_bounds = array<i64: 128, 128>}, {transform_indices = @transform_2, window_bounds = array<i64: 1, 128>}, {transform_indices = @transform_3, window_bounds = array<i64: 256, 128>}]} {
    %c0 = arith.constant 0 : index
    %c0_0 = arith.constant 0 : index
    %0 = vector.load %arg2[%c0, %c0_0] : memref<256x128xbf16, #tpu.memory_space<vmem>>, vector<256x128xbf16>
    %c0_1 = arith.constant 0 : index
    %c0_2 = arith.constant 0 : index
    %1 = vector.load %arg3[%c0_1, %c0_2] : memref<128x128xbf16, #tpu.memory_space<vmem>>, vector<128x128xbf16>
    %cst = arith.constant dense<0.000000e+00> : vector<256x128xf32>
    %2 = tpu.matmul %0, %1, %cst {dimension_numbers = #tpu.dot_dimension_numbers<[1], [0], [0], [1], [0, 0, 1, 1], [], []>} : vector<256x128xbf16>, vector<128x128xbf16>, vector<256x128xf32> -> vector<256x128xf32>
    %c0_3 = arith.constant 0 : index
    %c0_4 = arith.constant 0 : index
    %3 = vector.load %arg4[%c0_3, %c0_4] : memref<1x128xf32, #tpu.memory_space<vmem>>, vector<1x128xf32>
    %4 = vector.broadcast %3 : vector<1x128xf32> to vector<256x128xf32>
    %5 = arith.addf %2, %4 : vector<256x128xf32>
    %6 = arith.truncf %5 : vector<256x128xf32> to vector<256x128xbf16>
    %c0_5 = arith.constant 0 : index
    %c0_6 = arith.constant 0 : index
    %7 = vector.load %arg5[%c0_5, %c0_6] : memref<256x128xbf16, #tpu.memory_space<vmem>>, vector<256x128xbf16>
    tpu.vector_store %arg5[%c0_5, %c0_6], %6 {strides = array<i32>} : memref<256x128xbf16, #tpu.memory_space<vmem>>, vector<256x128xbf16>,
    return
  }
  func.func @transform_0(%arg0: i32, %arg1: i32) -> (i32, i32) {
    %c0_i32 = arith.constant 0 : i32
    %c0_i32_0 = arith.constant 0 : i32
    return %arg1, %c0_i32 : i32, i32
  }
  func.func @transform_1(%arg0: i32, %arg1: i32) -> (i32, i32) {
    %c0_i32 = arith.constant 0 : i32
    %c0_i32_0 = arith.constant 0 : i32
    return %c0_i32, %arg0 : i32, i32
  }
  func.func @transform_2(%arg0: i32, %arg1: i32) -> (i32, i32) {
    %c0_i32 = arith.constant 0 : i32
    %c0_i32_0 = arith.constant 0 : i32
    return %c0_i32, %arg0 : i32, i32
  }
  func.func @transform_3(%arg0: i32, %arg1: i32) -> (i32, i32) {
    %c0_i32 = arith.constant 0 : i32
    return %arg1, %arg0 : i32, i32
  }
}

</mosaic_0001>

<bundles_post_ra>
// kernel: tpu_custom_call.1
= control target key start
LH: loop header
LB: loop body
LE: loop exit
PB: predicated region body
PF: predicated region fallthrough
CT: control target
= control target key end

     0   :  { %8 = vsyncpa [#allocation3], 0  ;;  %s1751_s0 = inlined_call_operand.hbm [shape: bf16[1024,128], index: 0, kind: input, shape index: {}]   ;;  %s1752_s1 = inlined_call_operand.hbm [shape: bf16[128,128], index: 1, kind: input, shape index: {}]   ;;  %s1753_s2 = inlined_call_operand.vmem [shape: f32[1,128], index: 2, kind: input, shape index: {}]   ;;  %s1754_s3 = inlined_call_operand.hbm [shape: bf16[1024,128], index: 3, kind: output, shape index: {}]  }
   0x1   :  { %10 = vsyncpa [#allocation3 + $0x1], 0 }
   0x2   :  { %11 = vsyncpa [#allocation6], 0 }
   0x3   :  { %12 = vsyncpa [#allocation4], 0 }
   0x4   :  { %14 = vsyncpa [#allocation4 + $0x1], 0  ;;  %s1450_s12 = smov 0   ;;  %s1452_s13 = smov 0  }
   0x5   :  { %s1454_s14 = smov 0   ;;  %s1456_s15 = smov 0  }
   0x6   :  { %s1458_s16 = smov 0   ;;  %s1460_s17 = smov 0  }
   0x7 LB: > { %s884_s18 = sadd.s32 4294967295, %s1421_s17   ;;  %s885_s19 = sadd.s32 4294967294, %s1421_s17   ;;  %s1421_s17 = sphi %s1460_s17, %s20_s17   ;;  %s1417_s16 = sphi %s1458_s16, %s1777_s16   ;;  %s1413_s15 = sphi %s1456_s15, %s1776_s15   ;;  %s1409_s14 = sphi %s1454_s14, %s1775_s14   ;;  %s1405_s13 = sphi %s1452_s13, %s1774_s13   ;;  %s1401_s12 = sphi %s1450_s12, %s1773_s12  }
   0x8   : > { %p52_p0 = scmp.ne.s32.totalorder %s1405_s13, %s1401_s12  ;;  %p1484_p1 = scmp.eq.s32.totalorder %s884_s18, 0 }
   0x9   : > { %p1488_p2 = scmp.eq.s32.totalorder %s884_s18, 3  ;;  %p136_p3 = scmp.eq.s32.totalorder %s885_s19, 3 }
   0xa   : > { %s1759_s20 = scalar_select %p1484_p1, 1, 0 }
   0xb   : > { %s1760_s21 = scalar_select %p1488_p2, 1, 0 }
   0xc   : > { %p1494_p4 = por %p1484_p1, %p52_p0  ;;  %p886_p5 = scmp.ge.s32.totalorder %s1421_s17, 1 }
   0xd   : > { %p1499_p6 = por %p136_p3, %p52_p0  ;;  %p143_p7 = scmp.lt.s32.totalorder %s1421_s17, 5 }
   0xe   : > { %s1761_s22 = scalar_select %p1494_p4, 1, 0 }
   0xf   : > { %s1762_s23 = scalar_select %p1499_p6, 1, 0 }
  0x10   : > { %p1504_p8 = pnand %p886_p5, %p143_p7  ;;  %s1423_s25 = smov [#allocation5]  }
  0x11   : > { %s157_s26 = sshll.u32 %s1423_s25, 4  ;;  %s29_s28 = sadd.s32 1, %s1417_s16  ;;  %s158_s26 = int_to_ptr.vmem [resolvable:$true] %s157_s26 }
  0x12   : > { %s1763_s24 = scalar_select %p1504_p8, 1, 0 }
  0x13   : > { %p1184_p9 = pneg %p1504_p8  ;;  %s1277_s4 = scalar_lea.hbm %s1752_s1, 1024 }
  0x14   : > { %p1278_p11 = scmp.ne.s32.totalorder %s1752_s1, %s1277_s4  ;;  %p1284_p3 = scmp.lt.u32.totalorder %s1277_s4, %s1752_s1 }
  0x15   : > { %p1512_p10 = pnand %p1184_p9, %p1484_p1 }
  0x17   : > { %p1279_p12 = pneg %p1512_p10 }
  0x19   : > { %p1280_p13 = pnand %p1279_p12, %p1278_p11 }
  0x1b   : > { %p1281_p0 = pneg %p1280_p13 }
  0x1d   : > { %p1286_p5 = pnand %p1284_p3, %p1281_p0 }
  0x1f   : > { %1289 = shalt.err (!%p1286_p5)
}
  0x20   : > { %s1290_s9 = scalar_lea.vmem %s158_s26, 1024  ;;  %p1298_p1 = scmp.lt.s32.totalorder %s158_s26, %s158_s26 }
  0x21   : > { %p1291_p7 = scmp.ne.s32.totalorder %s158_s26, %s1290_s9  ;;  %p1299_p4 = scmp.lt.s32.totalorder %s1290_s9, %s1290_s9 }
  0x23   : > { %p1293_p9 = pnand %p1291_p7, %p1279_p12  ;;  %p1300_p8 = por %p1299_p4, %p1298_p1 }
  0x25   : > { %p1294_p6 = pneg %p1293_p9 }
  0x27   : > { %p1301_p2 = pnand %p1300_p8, %p1294_p6 }
  0x29   : > { %1304 = shalt.err (!%p1301_p2)
}
  0x2a   : > { %s1424_s10 = smov 64   ;;  %s1425_s11 = smov 4  }
  0x2b   : > { %1187 = dma.hbm_to_vmem [thread:$0]  (!%p1512_p10), %s1752_s1, 1024, %s158_s26, [#allocation6], %s1424_s10, %s1424_s10, %s1425_s11  }
  0x2c   : > { %p30_p1 = scmp.ge.s32.totalorder %s29_s28, 4  ;;  %s39_s25 = sadd.s32 1, %s1409_s14 }
  0x2d   : > { %p46_p2 = scmp.ne.s32.totalorder %s1409_s14, %s1405_s13  ;;  %p47_p4 = scmp.eq.s32.totalorder %s1421_s17, 0 }
  0x2e   : > { %s1779_s28 = smov (%p30_p1, %s29_s28), 0  ;;  %p1766_p8 = scmp.ne.s32.totalorder %s1760_s21, 0 }
  0x2f   : > { %p1542_p6 = por %p47_p4, %p46_p2  ;;  %s36_s30 = ssub.s32 %s1417_s16, %s1779_s28 }
  0x30   : > { %p1548_p11 = por %p1766_p8, %p46_p2  ;;  %p1197_p12 = scmp.lt.s32.totalorder %s1421_s17, 4 }
  0x31   : > { %p37_p10 = scmp.eq.s32.totalorder %s36_s30, 0  ;;  %s177_s26 = sand.u32 1, %s1409_s14  }
  0x32   : > { %s890_s4 = sshll.u32 %s177_s26, 7  ;;  %s959_s6 = sshll.u32 %s1417_s16, 11 }
  0x33   : > { %s1557_s5 = scalar_select %p37_p10, %s1409_s14, %s39_s25  }
  0x34   : > { %s1563_s9 = scalar_lea.hbm %s1751_s0, %s959_s6  ;;  %s181_s21 = scalar_lea.vmem [#allocation2], %s890_s4 }
  0x35   : > { %s188_s18 = sshll.u32 %s181_s21, 4  ;;  %p1569_p13 = pnand %p1197_p12, %p1542_p6  ;;  %s1565_s18 = int_to_ptr.vmem [resolvable:$true] %s188_s18 }
  0x36   : > { %s1573_s25 = scalar_lea.sflag [#allocation3], %s177_s26  ;;  %s1305_s30 = scalar_lea.hbm %s1563_s9, 2048 }
  0x37   : > { %p1306_p0 = scmp.ne.s32.totalorder %s1563_s9, %s1305_s30  ;;  %p1307_p3 = pneg %p1569_p13 }
  0x38   : > { %s1310_s29 = scalar_lea.hbm %s1751_s0, 8192  ;;  %p1311_p9 = scmp.lt.u32.totalorder %s1563_s9, %s1751_s0 }
  0x39   : > { %p1308_p5 = pnand %p1307_p3, %p1306_p0  ;;  %p1312_p1 = scmp.lt.u32.totalorder %s1310_s29, %s1305_s30 }
  0x3a   : > { %p1314_p4 = scmp.lt.u32.totalorder %s1305_s30, %s1563_s9 }
  0x3b   : > { %p1309_p7 = pneg %p1308_p5  ;;  %p1313_p2 = por %p1312_p1, %p1311_p9 }
  0x3d   : > { %p1315_p6 = por %p1314_p4, %p1313_p2 }
  0x3f   : > { %p1316_p8 = pnand %p1315_p6, %p1309_p7 }
  0x41   : > { %1319 = shalt.err (!%p1316_p8)
}
  0x42   : > { %s1320_s26 = scalar_lea.vmem %s1565_s18, 2048  ;;  %s1426_s21 = smov [#allocation2]  }
  0x43   : > { %p1321_p12 = scmp.ne.s32.totalorder %s1565_s18, %s1320_s26  ;;  %s1325_s4 = sshll.u32 %s1426_s21, 4  ;;  %s1326_s4 = int_to_ptr.vmem [resolvable:$false] %s1325_s4 }
  0x44   : > { %s1327_s6 = scalar_lea.vmem %s1326_s4, 4096  ;;  %p1328_p5 = scmp.lt.s32.totalorder %s1565_s18, %s1326_s4 }
  0x45   : > { %p1323_p10 = pnand %p1321_p12, %p1307_p3  ;;  %p1329_p9 = scmp.lt.s32.totalorder %s1327_s6, %s1320_s26 }
  0x47   : > { %p1324_p0 = pneg %p1323_p10  ;;  %p1330_p1 = por %p1329_p9, %p1328_p5 }
  0x49   : > { %p1331_p2 = pnand %p1330_p1, %p1324_p0 }
  0x4b   : > { %1334 = shalt.err (!%p1331_p2)
}
  0x4c   : > { %1191 = dma.hbm_to_vmem [thread:$0]  (!%p1569_p13), %s1563_s9, 2048, %s1565_s18, %s1573_s25, %s1424_s10, %s1424_s10, %s1425_s11  }
  0x4d   : > { %p1769_p3 = scmp.ne.s32.totalorder %s1763_s24, 0 }
  0x4e   : > { %s1607_s30 = sand.u32 (!%p1769_p3), 1, %s1405_s13   ;;  %p1770_p7 = scmp.ne.s32.totalorder (!%p1769_p3), %s1761_s22, 0 }
  0x4f   : > { %200 = sbr.rel (%p1769_p3) target bundleno = 381 (0x17d), region = 32  ;;  %s894_s29 = sshll.u32 (!%p1769_p3), %s1607_s30, 7 }
  0x50   : > { %s203_s7 = scalar_lea.sflag (!%p1769_p3), [#allocation3], %s1607_s30  ;;  %s1613_s19 = scalar_lea.vmem (!%p1769_p3), [#allocation2], %s894_s29 }
  0x56   : > { %1388 = dma.done.wait (%p1770_p7), %s203_s7, 2048  }
  0x57   : > { %1390 = vsyncadd (%p1770_p7), %s203_s7, 4294965248  ;;  %p1771_p13 = scmp.ne.s32.totalorder %s1759_s20, 0 }
  0x59   : > { %1392 = dma.done.wait (%p1771_p13), [#allocation6], 1024  }
  0x5a   : > { %1394 = vsyncadd (%p1771_p13), [#allocation6], 4294966272  ;;  %v1253_v0 = vld [vmem:[#allocation5] sm:$0xff]   ;;  %v1254_v1 = vld [vmem:[#allocation5 + $0x8] sm:$0xff]   ;;  %s1654_s24 = scalar_lea.vmem [#allocation7], %s894_s29  ;;  %s992_s10 = sshll.u32 %s1413_s15, 11 }
  0x5b   : > { %1112 = vmatprep.subr.bf16.mxu0 %v1253_v0  ;;  %1160 = vmatprep.subr.bf16.mxu1 %v1253_v0  ;;  %v1255_v2 = vld [vmem:[#allocation5 + $0x10] sm:$0xff]   ;;  %v1256_v3 = vld [vmem:[#allocation5 + $0x18] sm:$0xff]   ;;  %v1261_v4 = vld [vmem:[%s1613_s19] sm:$0xff]   ;;  %s777_s11 = sshll.u32 %s1654_s24, 4  ;;  %s1697_s18 = scalar_lea.hbm %s1754_s3, %s992_s10  ;;  %s1699_s11 = int_to_ptr.vmem [resolvable:$true] %s777_s11 }
  0x5c   : > { %1113 = vmatpush3.bf16.msra.mxu0 %v1253_v0  ;;  %1168 = vmatpush3.bf16.msra.mxu1 %v1253_v0  ;;  %v1262_v5 = vld [vmem:[%s1613_s19 + $0x40] sm:$0xff]   ;;  %v1258_v7 = vld [vmem:[#allocation5 + $0x28] sm:$0xff]   ;;  %v1259_v8 = vld [vmem:[#allocation5 + $0x30] sm:$0xff]   ;;  %s763_s25 = scalar_lea.sflag [#allocation4], %s1607_s30  ;;  %s1335_s8 = scalar_lea.vmem %s1699_s11, 2048 }
  0x5d   : > { %1114 = vmatprep.subr.bf16.mxu0 %v1254_v1  ;;  %1161 = vmatprep.subr.bf16.mxu1 %v1254_v1  ;;  %v1257_v6 = vld [vmem:[#allocation5 + $0x20] sm:$0xff]   ;;  %v1260_v9 = vld [vmem:[#allocation5 + $0x38] sm:$0xff]   ;;  %v1263_v10 = vld [vmem:[%s1613_s19 + $0x8] sm:$0xff]   ;;  %p1336_p4 = scmp.ne.s32.totalorder %s1699_s11, %s1335_s8  ;;  %s1427_s26 = smov [#allocation7]  }
  0x5e   : > { %1128 = vmatprep.mubr.bf16.mxu0 %v1261_v4  ;;  %1144 = vmatprep.mubr.bf16.mxu1 %v1262_v5  ;;  %v1264_v11 = vld [vmem:[%s1613_s19 + $0x48] sm:$0xff]   ;;  %v1265_v12 = vld [vmem:[%s1613_s19 + $0x10] sm:$0xff]   ;;  %v1267_v14 = vld [vmem:[%s1613_s19 + $0x18] sm:$0xff]   ;;  %s1339_s21 = sshll.u32 %s1427_s26, 4  ;;  %s1340_s21 = int_to_ptr.vmem [resolvable:$false] %s1339_s21 }
  0x5f   : > { %v1266_v13 = vld [vmem:[%s1613_s19 + $0x50] sm:$0xff]   ;;  %v1268_v15 = vld [vmem:[%s1613_s19 + $0x58] sm:$0xff]   ;;  %v1269_v16 = vld [vmem:[%s1613_s19 + $0x20] sm:$0xff]   ;;  %p1337_p6 = pnand %p1336_p4, %p1548_p11  ;;  %s1341_s4 = scalar_lea.vmem %s1340_s21, 4096 }
  0x60   : > { %1115 = vmatpush3.bf16.msra.mxu0 %v1254_v1  ;;  %1169 = vmatpush3.bf16.msra.mxu1 %v1254_v1  ;;  %v1270_v17 = vld [vmem:[%s1613_s19 + $0x60] sm:$0xff]   ;;  %v1271_v18 = vld [vmem:[%s1613_s19 + $0x28] sm:$0xff]   ;;  %v1273_v20 = vld [vmem:[%s1613_s19 + $0x30] sm:$0xff]   ;;  %p1342_p12 = scmp.lt.s32.totalorder %s1699_s11, %s1340_s21  ;;  %p1343_p10 = scmp.lt.s32.totalorder %s1341_s4, %s1335_s8 }
  0x61   : > { %1116 = vmatprep.subr.bf16.mxu0 %v1255_v2  ;;  %1162 = vmatprep.subr.bf16.mxu1 %v1255_v2  ;;  %v1272_v19 = vld [vmem:[%s1613_s19 + $0x68] sm:$0xff]   ;;  %v1274_v21 = vld [vmem:[%s1613_s19 + $0x70] sm:$0xff]   ;;  %v1275_v22 = vld [vmem:[%s1613_s19 + $0x38] sm:$0xff]   ;;  %p1338_p8 = pneg %p1337_p6 }
  0x62   : > { %v1276_v23 = vld [vmem:[%s1613_s19 + $0x78] sm:$0xff]   ;;  %v1642_v25 = vld [vmem:[%s1753_s2] ss:$0 sm:$0xff]  ;;  %p1344_p0 = por %p1343_p10, %p1342_p12 }
  0x64   : > { %1117 = vmatpush3.bf16.msra.mxu0 %v1255_v2  ;;  %1170 = vmatpush3.bf16.msra.mxu1 %v1255_v2  ;;  %p1345_p5 = pnand %p1344_p0, %p1338_p8 }
  0x65   : > { %1118 = vmatprep.subr.bf16.mxu0 %v1256_v3  ;;  %1163 = vmatprep.subr.bf16.mxu1 %v1256_v3 }
  0x68   : > { %1119 = vmatpush3.bf16.msra.mxu0 %v1256_v3  ;;  %1171 = vmatpush3.bf16.msra.mxu1 %v1256_v3 }
  0x69   : > { %1120 = vmatprep.subr.bf16.mxu0 %v1257_v6  ;;  %1164 = vmatprep.subr.bf16.mxu1 %v1257_v6 }
  0x6c   : > { %1121 = vmatpush3.bf16.msra.mxu0 %v1257_v6  ;;  %1172 = vmatpush3.bf16.msra.mxu1 %v1257_v6 }
  0x6d   : > { %1122 = vmatprep.subr.bf16.mxu0 %v1258_v7  ;;  %1165 = vmatprep.subr.bf16.mxu1 %v1258_v7 }
  0x70   : > { %1123 = vmatpush3.bf16.msra.mxu0 %v1258_v7  ;;  %1173 = vmatpush3.bf16.msra.mxu1 %v1258_v7 }
  0x71   : > { %1124 = vmatprep.subr.bf16.mxu0 %v1259_v8  ;;  %1166 = vmatprep.subr.bf16.mxu1 %v1259_v8 }
  0x74   : > { %1125 = vmatpush3.bf16.msra.mxu0 %v1259_v8  ;;  %1174 = vmatpush3.bf16.msra.mxu1 %v1259_v8 }
  0x75   : > { %1126 = vmatprep.subr.bf16.mxu0 %v1260_v9  ;;  %1167 = vmatprep.subr.bf16.mxu1 %v1260_v9 }
  0x78   : > { %1127 = vmatpush3.bf16.msra.mxu0 %v1260_v9  ;;  %1175 = vmatpush3.bf16.msra.mxu1 %v1260_v9 }
  0x7b   : > { %1129 = vmatmul.mubr.bf16.vlgmr.msra.gmra.mrb[0].mxu0 %v1263_v10  ;;  %1145 = vmatmul.mubr.bf16.vlgmr.msra.gmra.mrb[0].mxu1 %v1264_v11 }
  0x7c   : > { %1132 = vmatprep.mubr.bf16.mxu0 %v1265_v12  ;;  %1148 = vmatprep.mubr.bf16.mxu1 %v1266_v13 }
  0x83   : > { %1133 = vmatmul.mubr.bf16.gmra.mrb[4].mxu0 %v1267_v14  ;;  %1149 = vmatmul.mubr.bf16.gmra.mrb[4].mxu1 %v1268_v15 }
  0x84   : > { %1136 = vmatprep.mubr.bf16.mxu0 %v1269_v16  ;;  %1152 = vmatprep.mubr.bf16.mxu1 %v1270_v17 }
  0x8b   : > { %1137 = vmatmul.mubr.bf16.gmra.mrb[8].mxu0 %v1271_v18  ;;  %1153 = vmatmul.mubr.bf16.gmra.mrb[8].mxu1 %v1272_v19 }
  0x8c   : > { %1140 = vmatprep.mubr.bf16.mxu0 %v1273_v20  ;;  %1156 = vmatprep.mubr.bf16.mxu1 %v1274_v21 }
  0x93   : > { %1141 = vmatmul.mubr.bf16.gmra.mrb[12].mxu0 %v1275_v22  ;;  %1157 = vmatmul.mubr.bf16.gmra.mrb[12].mxu1 %v1276_v23 }
 0x14e   : > { %v1130_v24 = vpop.f32.mrb[0].mxu0  ;;  %v1146_v26 = vpop.f32.mrb[0].mxu1 }
 0x14f   : > { %v475_v27 = vpop.f32.mrb[1].mxu0  ;;  %v539_v28 = vpop.f32.mrb[1].mxu1  ;;  %v484_v31 = vadd.f32 %v1130_v24, %v1642_v25  ;;  %v548_v32 = vadd.f32 %v1146_v26, %v1642_v25 }
 0x150   : > { %v1131_v29 = vpop.f32.mrb[2].mxu0  ;;  %v1147_v30 = vpop.f32.mrb[2].mxu1  ;;  %v476_v37 = vadd.f32 %v1642_v25, %v475_v27  ;;  %v540_v38 = vadd.f32 %v1642_v25, %v539_v28 }
 0x151   : > { %v487_v33 = vadd.f32 %v1131_v29, %v1642_v25  ;;  %v551_v34 = vadd.f32 %v1147_v30, %v1642_v25  ;;  %v478_v35 = vpop.f32.mrb[3].mxu0  ;;  %v542_v36 = vpop.f32.mrb[3].mxu1 }
 0x152   : > { %v479_v39 = vadd.f32 %v1642_v25, %v478_v35  ;;  %v543_v40 = vadd.f32 %v1642_v25, %v542_v36 }
 0x153   : > { %v1001_v41 = vpack.c.bf16 %v487_v33, %v484_v31  ;;  %v1041_v42 = vpack.c.bf16 %v551_v34, %v548_v32 }
 0x154   : > { %v996_v43 = vpack.c.bf16 %v479_v39, %v476_v37  ;;  %v1036_v44 = vpack.c.bf16 %v543_v40, %v540_v38 }
 0x155   : > { %1073 = vst [vmem:[%s1654_s24 + $0x8] sm:$0xff] %v1001_v41   ;;  %1081 = vst [vmem:[%s1654_s24 + $0x48] sm:$0xff] %v1041_v42  }
 0x156   : > { %997 = vst [vmem:[%s1654_s24] sm:$0xff] %v996_v43   ;;  %1080 = vst [vmem:[%s1654_s24 + $0x40] sm:$0xff] %v1036_v44   ;;  %v1134_v45 = vpop.f32.mrb[4].mxu0  ;;  %v1150_v46 = vpop.f32.mrb[4].mxu1 }
 0x157   : > { %v491_v47 = vpop.f32.mrb[5].mxu0  ;;  %v555_v48 = vpop.f32.mrb[5].mxu1  ;;  %v500_v51 = vadd.f32 %v1134_v45, %v1642_v25  ;;  %v564_v52 = vadd.f32 %v1150_v46, %v1642_v25 }
 0x158   : > { %v1135_v49 = vpop.f32.mrb[6].mxu0  ;;  %v1151_v50 = vpop.f32.mrb[6].mxu1  ;;  %v492_v57 = vadd.f32 %v1642_v25, %v491_v47  ;;  %v556_v58 = vadd.f32 %v1642_v25, %v555_v48 }
 0x159   : > { %v503_v53 = vadd.f32 %v1135_v49, %v1642_v25  ;;  %v567_v54 = vadd.f32 %v1151_v50, %v1642_v25  ;;  %v494_v55 = vpop.f32.mrb[7].mxu0  ;;  %v558_v56 = vpop.f32.mrb[7].mxu1 }
 0x15a   : > { %v495_v59 = vadd.f32 %v1642_v25, %v494_v55  ;;  %v559_v60 = vadd.f32 %v1642_v25, %v558_v56 }
 0x15b   : > { %v1011_v61 = vpack.c.bf16 %v503_v53, %v500_v51  ;;  %v1051_v62 = vpack.c.bf16 %v567_v54, %v564_v52 }
 0x15c   : > { %v1006_v63 = vpack.c.bf16 %v495_v59, %v492_v57  ;;  %v1046_v0 = vpack.c.bf16 %v559_v60, %v556_v58 }
 0x15d   : > { %1075 = vst [vmem:[%s1654_s24 + $0x18] sm:$0xff] %v1011_v61   ;;  %1083 = vst [vmem:[%s1654_s24 + $0x58] sm:$0xff] %v1051_v62  }
 0x15e   : > { %1074 = vst [vmem:[%s1654_s24 + $0x10] sm:$0xff] %v1006_v63   ;;  %1082 = vst [vmem:[%s1654_s24 + $0x50] sm:$0xff] %v1046_v0   ;;  %v1138_v1 = vpop.f32.mrb[8].mxu0  ;;  %v1154_v2 = vpop.f32.mrb[8].mxu1 }
 0x15f   : > { %v507_v3 = vpop.f32.mrb[9].mxu0  ;;  %v571_v4 = vpop.f32.mrb[9].mxu1  ;;  %v516_v7 = vadd.f32 %v1138_v1, %v1642_v25  ;;  %v580_v8 = vadd.f32 %v1154_v2, %v1642_v25 }
 0x160   : > { %v1139_v5 = vpop.f32.mrb[10].mxu0  ;;  %v1155_v6 = vpop.f32.mrb[10].mxu1  ;;  %v508_v13 = vadd.f32 %v1642_v25, %v507_v3  ;;  %v572_v14 = vadd.f32 %v1642_v25, %v571_v4 }
 0x161   : > { %v519_v9 = vadd.f32 %v1139_v5, %v1642_v25  ;;  %v583_v10 = vadd.f32 %v1155_v6, %v1642_v25  ;;  %v510_v11 = vpop.f32.mrb[11].mxu0  ;;  %v574_v12 = vpop.f32.mrb[11].mxu1 }
 0x162   : > { %v511_v15 = vadd.f32 %v1642_v25, %v510_v11  ;;  %v575_v16 = vadd.f32 %v1642_v25, %v574_v12 }
 0x163   : > { %v1021_v17 = vpack.c.bf16 %v519_v9, %v516_v7  ;;  %v1061_v18 = vpack.c.bf16 %v583_v10, %v580_v8 }
 0x164   : > { %v1016_v19 = vpack.c.bf16 %v511_v15, %v508_v13  ;;  %v1056_v20 = vpack.c.bf16 %v575_v16, %v572_v14 }
 0x165   : > { %1077 = vst [vmem:[%s1654_s24 + $0x28] sm:$0xff] %v1021_v17   ;;  %1085 = vst [vmem:[%s1654_s24 + $0x68] sm:$0xff] %v1061_v18  }
 0x166   : > { %1076 = vst [vmem:[%s1654_s24 + $0x20] sm:$0xff] %v1016_v19   ;;  %1084 = vst [vmem:[%s1654_s24 + $0x60] sm:$0xff] %v1056_v20   ;;  %v1142_v21 = vpop.f32.mrb[12].mxu0  ;;  %v1158_v22 = vpop.f32.mrb[12].mxu1 }
 0x167   : > { %v523_v23 = vpop.f32.mrb[13].mxu0  ;;  %v587_v24 = vpop.f32.mrb[13].mxu1  ;;  %v532_v28 = vadd.f32 %v1142_v21, %v1642_v25  ;;  %v596_v29 = vadd.f32 %v1158_v22, %v1642_v25 }
 0x168   : > { %v1143_v26 = vpop.f32.mrb[14].mxu0  ;;  %v1159_v27 = vpop.f32.mrb[14].mxu1  ;;  %v524_v34 = vadd.f32 %v1642_v25, %v523_v23  ;;  %v588_v35 = vadd.f32 %v1642_v25, %v587_v24 }
 0x169   : > { %v535_v30 = vadd.f32 %v1143_v26, %v1642_v25  ;;  %v599_v31 = vadd.f32 %v1159_v27, %v1642_v25  ;;  %v526_v32 = vpop.f32.mrb[15].mxu0  ;;  %v590_v33 = vpop.f32.mrb[15].mxu1 }
 0x16a   : > { %v527_v36 = vadd.f32 %v1642_v25, %v526_v32  ;;  %v591_v37 = vadd.f32 %v1642_v25, %v590_v33 }
 0x16b   : > { %v1031_v38 = vpack.c.bf16 %v535_v30, %v532_v28  ;;  %v1071_v39 = vpack.c.bf16 %v599_v31, %v596_v29 }
 0x16c   : > { %v1026_v40 = vpack.c.bf16 %v527_v36, %v524_v34  ;;  %v1066_v41 = vpack.c.bf16 %v591_v37, %v588_v35 }
 0x16d   : > { %1079 = vst [vmem:[%s1654_s24 + $0x38] sm:$0xff] %v1031_v38   ;;  %1087 = vst [vmem:[%s1654_s24 + $0x78] sm:$0xff] %v1071_v39  }
 0x16e   : > { %1078 = vst [vmem:[%s1654_s24 + $0x30] sm:$0xff] %v1026_v40   ;;  %1086 = vst [vmem:[%s1654_s24 + $0x70] sm:$0xff] %v1066_v41  }
 0x16f   : > { %1348 = shalt.err (!%p1345_p5)
}
 0x170   : > { %s1349_s6 = scalar_lea.hbm %s1697_s18, 2048  ;;  %s1353_s19 = scalar_lea.hbm %s1754_s3, 8192 }
 0x171   : > { %p1350_p9 = scmp.ne.s32.totalorder %s1697_s18, %s1349_s6  ;;  %p1354_p3 = scmp.lt.u32.totalorder %s1697_s18, %s1754_s3 }
 0x172   : > { %p1355_p7 = scmp.lt.u32.totalorder %s1353_s19, %s1349_s6  ;;  %p1357_p4 = scmp.lt.u32.totalorder %s1349_s6, %s1697_s18 }
 0x173   : > { %p1351_p1 = pnand %p1350_p9, %p1548_p11 }
 0x174   : > { %p1356_p13 = por %p1355_p7, %p1354_p3 }
 0x175   : > { %p1352_p2 = pneg %p1351_p1 }
 0x176   : > { %p1358_p6 = por %p1357_p4, %p1356_p13 }
 0x178   : > { %p1359_p8 = pnand %p1358_p6, %p1352_p2 }
 0x17a   : > { %1362 = shalt.err (!%p1359_p8)
}
 0x17b   : > { %s1428_s24 = smov 64   ;;  %s1429_s10 = smov 4  }
 0x17c   : > { %1182 = dma.vmem_to_hbm [thread:$0]  (%p1548_p11), %s1699_s11, 2048, %s1697_s18, %s763_s25, %s1428_s24, %s1428_s24, %s1429_s10  }
 0x17d PF: > { %p1199_p12 = scmp.ge.s32.totalorder %s1421_s17, 2  ;;  %s792_s15 = sand.u32 1, %s1401_s12  }
 0x17e   : > { %p1772_p10 = scmp.ne.s32.totalorder %s1762_s23, 0  ;;  %s793_s9 = scalar_lea.sflag [#allocation4], %s792_s15 }
 0x180   : > { %p1193_p0 = pnand %p1199_p12, %p1772_p10 }
 0x182   : > { %1396 = dma.done.wait (!%p1193_p0), %s793_s9, 2048  }
 0x183   : > { %1398 = vsyncadd (!%p1193_p0), %s793_s9, 4294965248  ;;  %s20_s17 = sadd.s32 1, %s1421_s17   ;;  %s1773_s12 = smov %s1405_s13 }
 0x184   : > { %p17_p5 = scmp.ge.s32.totalorder %s20_s17, 6   ;;  %s1774_s13 = smov %s1409_s14 }
 0x185   : > { %s1775_s14 = smov %s1557_s5  ;;  %s1776_s15 = smov %s1417_s16 }
 0x186   : > { %s1777_s16 = smov %s1779_s28  ;;  %19 = sbr.rel (!%p17_p5) target bundleno = 7 (0x7), region = 85 }
 0x18d   :  { %798 = vsyncpa [#allocation3], 1 }
 0x18e   :  { %800 = vsyncpa [#allocation3 + $0x1], 1 }
 0x18f   :  { %801 = vsyncpa [#allocation6], 1 }
 0x190   :  { %802 = vsyncpa [#allocation4], 1 }
 0x191   :  { %804 = vsyncpa [#allocation4 + $0x1], 1 }

</bundles_post_ra>
